<compile_context>
chip_gen: v7x
topology: tpu7x:2x2x1
jax: 0.10.0
libtpu: 0.0.40
codegen_flags: <defaults>
</compile_context>

<pallas_src>
import math

import jax
import jax.numpy as jnp
import numpy as np
from jax import lax
from jax.experimental import pallas as pl
from jax.experimental.pallas import tpu as pltpu

KH, KW = 3, 3            # hard-coded by the module (__init__ forces 3x3, padding=1)
_NTAPS = KH * KW
_CHANNEL_UNROLL_MAX = 16  # static channel unroll below this; lax.fori_loop above


def _make_conv_kernel(C, H, W):
    HW = H * W

    def conv_kernel(x_ref, w_ref, o_ref):
        # x_ref: (nb, C, HW) VMEM  -- nb images, spatial dims flattened (lane-dense).
        # w_ref: (C*9,) float32 SMEM -- 3x3 taps as scalars.
        # o_ref: (1, nb, HW) VMEM -- lane-dense output slab.
        nb = x_ref.shape[0]

        # Boundary masks implementing padding=1 in-kernel (built once per step).
        pos = lax.broadcasted_iota(jnp.int32, (1, HW), 1)
        col = pos % W
        row_ok = {-1: pos >= W, 0: None, 1: pos < (H - 1) * W}
        col_ok = {-1: col >= 1, 0: None, 1: col < (W - 1)}

        def weighted_channel_sum(t):
            # sum_c w[c, t] * x[:, c, :]  on UN-shifted data -> (nb, HW) f32.
            if C <= _CHANNEL_UNROLL_MAX:
                s = x_ref[:, 0, :].astype(jnp.float32) * w_ref[t]
                for c in range(1, C):
                    s = s + x_ref[:, c, :].astype(jnp.float32) * w_ref[c * _NTAPS + t]
                return s

            # Large C: bounded live ranges via fori_loop with modest unroll.
            def body(c, s):
                return s + x_ref[:, c, :].astype(jnp.float32) * w_ref[c * _NTAPS + t]

            return lax.fori_loop(0, C, body, jnp.zeros((nb, HW), jnp.float32),
                                 unroll=4)

        acc = None
        for kh in range(KH):
            dh = kh - 1
            for kw in range(KW):
                dw = kw - 1
                t = kh * KW + kw

                s = weighted_channel_sum(t)

                # Tap shift as a single lane rotation of the channel-summed
                # partial; wrapped lanes are exactly the zero-padding positions
                # and are killed by the single per-tap mask below.
                shift = dh * W + dw
                if shift != 0:
                    s = pltpu.roll(s, (-shift) % HW, axis=1)

                m = row_ok[dh]
                if col_ok[dw] is not None:
                    m = col_ok[dw] if m is None else jnp.logical_and(m, col_ok[dw])
                if m is not None:
                    s = jnp.where(m, s, 0.0)

                acc = s if acc is None else acc + s

        o_ref[0] = acc.astype(o_ref.dtype)

    return conv_kernel


def _device_kind():
    try:
        return jax.devices()[0].device_kind.lower()
    except Exception:
        return ""


def conv_forward(x, weight, *, batch_block=None, slab_budget_bytes=None):
    """nn.Conv2d(C, 1, 3, padding=1, bias=False): (N, C, H, W) -> (N, 1, H, W)."""
    N, C, H, W = x.shape
    assert weight.shape == (1, C, KH, KW)
    HW = H * W

    kind = _device_kind()
    is_v7x = ("v7" in kind) or ("7x" in kind)
    is_v6 = "v6" in kind

    # Per-generation input-slab budget (amortize ~0.35 us/step without
    # pressuring scoped VMEM: v5e 16 MiB default, v7x 64 MiB physical).
    if slab_budget_bytes is None:
        slab_budget_bytes = (8 << 20) if is_v6 else (4 << 20)

    # Metadata-only reshapes; padding is handled fully in-kernel.
    x_flat = x.reshape(N, C, HW)
    w_flat = weight.reshape(C * KH * KW).astype(jnp.float32)

    per_image = C * HW * x.dtype.itemsize
    if batch_block is None:
        nb = max(1, min(N, slab_budget_bytes // max(per_image, 1)))
        # v7x has 2 TensorCores; keep grid_n >= 2 so both get work.
        if is_v7x and N >= 2:
            nb = min(nb, -(-N // 2))
    else:
        nb = batch_block
        assert 1 <= nb <= N
    grid_n = -(-N // nb)  # cdiv: partial last block is read padded, sliced off below

    # Raise the scoped-VMEM limit only when the estimated footprint
    # (double-buffered input + output + f32 temps) exceeds every default.
    slab_bytes = nb * C * HW * x.dtype.itemsize
    out_bytes = nb * HW * x.dtype.itemsize
    est = 2 * slab_bytes + 2 * out_bytes + 4 * nb * HW * 4 + (1 << 20)
    if est > (12 << 20):
        cap = (48 << 20) if is_v7x else (96 << 20)
        vmem_limit = int(min(max(2 * est, 32 << 20), cap))
    else:
        vmem_limit = None

    kernel = _make_conv_kernel(C, H, W)

    out = pl.pallas_call(
        kernel,
        out_shape=jax.ShapeDtypeStruct((grid_n, nb, HW), x.dtype),
        grid_spec=pltpu.PrefetchScalarGridSpec(
            num_scalar_prefetch=0,
            grid=(grid_n,),
            in_specs=[
                # (nb, C, HW): last two dims equal the full array dims and the
                # lane dim is dense -> (8,128) rule satisfied, efficient DMA.
                pl.BlockSpec((nb, C, HW), lambda g: (g, 0, 0)),
                # 3x3 weights as scalars in SMEM.
                pl.BlockSpec(memory_space=pltpu.MemorySpace.SMEM),
            ],
            # Lane-dense output slab -> unmasked vector stores.
            out_specs=pl.BlockSpec((1, nb, HW), lambda g: (g, 0, 0)),
        ),
        compiler_params=pltpu.CompilerParams(
            dimension_semantics=("parallel",),
            vmem_limit_bytes=vmem_limit,
        ),
    )(x_flat, w_flat)

    out = out.reshape(grid_n * nb, HW)[:N]
    return out.reshape(N, 1, H, W)


if __name__ == "__main__":
    # Small shapes consistent with the module's forward.
    N, C, H, W = 2, 4, 16, 16

    key = jax.random.PRNGKey(0)
    k_x, k_w = jax.random.split(key)
    x = jax.random.normal(k_x, (N, C, H, W), dtype=jnp.float32)
    # Deterministic synthetic weights (out_channels=1, bias=False).
    fan_in = C * KH * KW
    bound = 1.0 / math.sqrt(fan_in)
    weight = jax.random.uniform(
        k_w, (1, C, KH, KW), dtype=jnp.float32, minval=-bound, maxval=bound
    )

    out = conv_forward(x, weight)
    out = jax.block_until_ready(out)

    # Sanity check against XLA's conv (same semantics as nn.Conv2d).
    ref = jax.lax.conv_general_dilated(
        x, weight, window_strides=(1, 1), padding=((1, 1), (1, 1)),
        dimension_numbers=("NCHW", "OIHW", "NCHW"),
    )
    assert out.shape == (N, 1, H, W)
    np.testing.assert_allclose(np.asarray(out), np.asarray(ref),
                               rtol=1e-5, atol=1e-5)

    print("KERNEL_OK")
</pallas_src>

<mosaic_0001>
module attributes {stable_mosaic.version = 11 : i64} {
  func.func @conv_kernel(%arg0: i32, %arg1: memref<2x4x256xf32, #tpu.memory_space<vmem>>, %arg2: memref<36xf32, #tpu.memory_space<smem>>, %arg3: memref<1x2x256xf32, #tpu.memory_space<vmem>>) attributes {dimension_semantics = [#tpu.dimension_semantics<parallel>], iteration_bounds = array<i64: 1>, scalar_prefetch = 0 : i64, scratch_operands = 0 : i64, tpu.core_type = #tpu.core_type<tc>, window_params = [{transform_indices = @transform_0, window_bounds = array<i64: 2, 4, 256>}, {transform_indices = @transform_1, window_bounds = array<i64: 36>}, {transform_indices = @transform_2, window_bounds = array<i64: 1, 2, 256>}]} {
    %0 = tpu.iota {dimensions = array<i32: 1>} : vector<1x256xi32>
    %c16_i32 = arith.constant 16 : i32
    %c0_i32 = arith.constant 0 : i32
    %1 = arith.cmpi eq, %c16_i32, %c0_i32 : i32
    %c1_i32 = arith.constant 1 : i32
    %2 = arith.select %1, %c1_i32, %c16_i32 : i32
    %3 = vector.broadcast %2 : i32 to vector<1x256xi32>
    %4 = arith.remsi %0, %3 : vector<1x256xi32>
    %c0_i32_0 = arith.constant 0 : i32
    %5 = vector.broadcast %c0_i32_0 : i32 to vector<1x256xi32>
    %6 = arith.cmpi ne, %4, %5 : vector<1x256xi32>
    %c0_i32_1 = arith.constant 0 : i32
    %7 = vector.broadcast %c0_i32_1 : i32 to vector<1x256xi32>
    %8 = arith.cmpi slt, %4, %7 : vector<1x256xi32>
    %c0_i32_2 = arith.constant 0 : i32
    %9 = arith.cmpi slt, %2, %c0_i32_2 : i32
    %10 = vector.broadcast %9 : i1 to vector<1x256xi1>
    %11 = vector.broadcast %10 : vector<1x256xi1> to vector<1x256xi1>
    %12 = arith.xori %8, %11 : vector<1x256xi1>
    %13 = arith.andi %12, %6 : vector<1x256xi1>
    %14 = vector.broadcast %2 : i32 to vector<1x256xi32>
    %15 = arith.addi %4, %14 : vector<1x256xi32>
    %16 = arith.select %13, %15, %4 : vector<1x256xi1>, vector<1x256xi32>
    %c16_i32_3 = arith.constant 16 : i32
    %17 = vector.broadcast %c16_i32_3 : i32 to vector<1x256xi32>
    %18 = arith.cmpi sge, %0, %17 : vector<1x256xi32>
    %c240_i32 = arith.constant 240 : i32
    %19 = vector.broadcast %c240_i32 : i32 to vector<1x256xi32>
    %20 = arith.cmpi slt, %0, %19 : vector<1x256xi32>
    %c1_i32_4 = arith.constant 1 : i32
    %21 = vector.broadcast %c1_i32_4 : i32 to vector<1x256xi32>
    %22 = arith.cmpi sge, %16, %21 : vector<1x256xi32>
    %c15_i32 = arith.constant 15 : i32
    %23 = vector.broadcast %c15_i32 : i32 to vector<1x256xi32>
    %24 = arith.cmpi slt, %16, %23 : vector<1x256xi32>
    %c0 = arith.constant 0 : index
    %c0_5 = arith.constant 0 : index
    %c0_6 = arith.constant 0 : index
    %25 = vector.load %arg1[%c0, %c0_5, %c0_6] : memref<2x4x256xf32, #tpu.memory_space<vmem>>, vector<2x1x256xf32>
    %26 = vector.shape_cast %25 : vector<2x1x256xf32> to vector<2x256xf32>
    %c0_7 = arith.constant 0 : index
    %27 = memref.load %arg2[%c0_7] : memref<36xf32, #tpu.memory_space<smem>>
    %28 = vector.broadcast %27 : f32 to vector<2x256xf32>
    %29 = arith.mulf %26, %28 : vector<2x256xf32>
    %c0_8 = arith.constant 0 : index
    %c1 = arith.constant 1 : index
    %c0_9 = arith.constant 0 : index
    %30 = vector.load %arg1[%c0_8, %c1, %c0_9] : memref<2x4x256xf32, #tpu.memory_space<vmem>>, vector<2x1x256xf32>
    %31 = vector.shape_cast %30 : vector<2x1x256xf32> to vector<2x256xf32>
    %c9 = arith.constant 9 : index
    %32 = memref.load %arg2[%c9] : memref<36xf32, #tpu.memory_space<smem>>
    %33 = vector.broadcast %32 : f32 to vector<2x256xf32>
    %34 = arith.mulf %31, %33 : vector<2x256xf32>
    %35 = arith.addf %29, %34 : vector<2x256xf32>
    %c0_10 = arith.constant 0 : index
    %c2 = arith.constant 2 : index
    %c0_11 = arith.constant 0 : index
    %36 = vector.load %arg1[%c0_10, %c2, %c0_11] : memref<2x4x256xf32, #tpu.memory_space<vmem>>, vector<2x1x256xf32>
    %37 = vector.shape_cast %36 : vector<2x1x256xf32> to vector<2x256xf32>
    %c18 = arith.constant 18 : index
    %38 = memref.load %arg2[%c18] : memref<36xf32, #tpu.memory_space<smem>>
    %39 = vector.broadcast %38 : f32 to vector<2x256xf32>
    %40 = arith.mulf %37, %39 : vector<2x256xf32>
    %41 = arith.addf %35, %40 : vector<2x256xf32>
    %c0_12 = arith.constant 0 : index
    %c3 = arith.constant 3 : index
    %c0_13 = arith.constant 0 : index
    %42 = vector.load %arg1[%c0_12, %c3, %c0_13] : memref<2x4x256xf32, #tpu.memory_space<vmem>>, vector<2x1x256xf32>
    %43 = vector.shape_cast %42 : vector<2x1x256xf32> to vector<2x256xf32>
    %c27 = arith.constant 27 : index
    %44 = memref.load %arg2[%c27] : memref<36xf32, #tpu.memory_space<smem>>
    %45 = vector.broadcast %44 : f32 to vector<2x256xf32>
    %46 = arith.mulf %43, %45 : vector<2x256xf32>
    %47 = arith.addf %41, %46 : vector<2x256xf32>
    %c17_i32 = arith.constant 17 : i32
    %48 = tpu.dynamic_rotate %47 by %c17_i32 dim 1 : vector<2x256xf32>, i32 -> vector<2x256xf32>
    %49 = arith.andi %18, %22 : vector<1x256xi1>
    %cst = arith.constant 0.000000e+00 : f32
    %50 = vector.shape_cast %49 : vector<1x256xi1> to vector<1x256xi1>
    %51 = vector.broadcast %50 : vector<1x256xi1> to vector<2x256xi1>
    %52 = vector.broadcast %cst : f32 to vector<2x256xf32>
    %53 = arith.select %51, %48, %52 : vector<2x256xi1>, vector<2x256xf32>
    %c0_14 = arith.constant 0 : index
    %c0_15 = arith.constant 0 : index
    %c0_16 = arith.constant 0 : index
    %54 = vector.load %arg1[%c0_14, %c0_15, %c0_16] : memref<2x4x256xf32, #tpu.memory_space<vmem>>, vector<2x1x256xf32>
    %55 = vector.shape_cast %54 : vector<2x1x256xf32> to vector<2x256xf32>
    %c1_17 = arith.constant 1 : index
    %56 = memref.load %arg2[%c1_17] : memref<36xf32, #tpu.memory_space<smem>>
    %57 = vector.broadcast %56 : f32 to vector<2x256xf32>
    %58 = arith.mulf %55, %57 : vector<2x256xf32>
    %c0_18 = arith.constant 0 : index
    %c1_19 = arith.constant 1 : index
    %c0_20 = arith.constant 0 : index
    %59 = vector.load %arg1[%c0_18, %c1_19, %c0_20] : memref<2x4x256xf32, #tpu.memory_space<vmem>>, vector<2x1x256xf32>
    %60 = vector.shape_cast %59 : vector<2x1x256xf32> to vector<2x256xf32>
    %c10 = arith.constant 10 : index
    %61 = memref.load %arg2[%c10] : memref<36xf32, #tpu.memory_space<smem>>
    %62 = vector.broadcast %61 : f32 to vector<2x256xf32>
    %63 = arith.mulf %60, %62 : vector<2x256xf32>
    %64 = arith.addf %58, %63 : vector<2x256xf32>
    %c0_21 = arith.constant 0 : index
    %c2_22 = arith.constant 2 : index
    %c0_23 = arith.constant 0 : index
    %65 = vector.load %arg1[%c0_21, %c2_22, %c0_23] : memref<2x4x256xf32, #tpu.memory_space<vmem>>, vector<2x1x256xf32>
    %66 = vector.shape_cast %65 : vector<2x1x256xf32> to vector<2x256xf32>
    %c19 = arith.constant 19 : index
    %67 = memref.load %arg2[%c19] : memref<36xf32, #tpu.memory_space<smem>>
    %68 = vector.broadcast %67 : f32 to vector<2x256xf32>
    %69 = arith.mulf %66, %68 : vector<2x256xf32>
    %70 = arith.addf %64, %69 : vector<2x256xf32>
    %c0_24 = arith.constant 0 : index
    %c3_25 = arith.constant 3 : index
    %c0_26 = arith.constant 0 : index
    %71 = vector.load %arg1[%c0_24, %c3_25, %c0_26] : memref<2x4x256xf32, #tpu.memory_space<vmem>>, vector<2x1x256xf32>
    %72 = vector.shape_cast %71 : vector<2x1x256xf32> to vector<2x256xf32>
    %c28 = arith.constant 28 : index
    %73 = memref.load %arg2[%c28] : memref<36xf32, #tpu.memory_space<smem>>
    %74 = vector.broadcast %73 : f32 to vector<2x256xf32>
    %75 = arith.mulf %72, %74 : vector<2x256xf32>
    %76 = arith.addf %70, %75 : vector<2x256xf32>
    %c16_i32_27 = arith.constant 16 : i32
    %77 = tpu.dynamic_rotate %76 by %c16_i32_27 dim 1 : vector<2x256xf32>, i32 -> vector<2x256xf32>
    %cst_28 = arith.constant 0.000000e+00 : f32
    %78 = vector.shape_cast %18 : vector<1x256xi1> to vector<1x256xi1>
    %79 = vector.broadcast %78 : vector<1x256xi1> to vector<2x256xi1>
    %80 = vector.broadcast %cst_28 : f32 to vector<2x256xf32>
    %81 = arith.select %79, %77, %80 : vector<2x256xi1>, vector<2x256xf32>
    %82 = arith.addf %53, %81 : vector<2x256xf32>
    %c0_29 = arith.constant 0 : index
    %c0_30 = arith.constant 0 : index
    %c0_31 = arith.constant 0 : index
    %83 = vector.load %arg1[%c0_29, %c0_30, %c0_31] : memref<2x4x256xf32, #tpu.memory_space<vmem>>, vector<2x1x256xf32>
    %84 = vector.shape_cast %83 : vector<2x1x256xf32> to vector<2x256xf32>
    %c2_32 = arith.constant 2 : index
    %85 = memref.load %arg2[%c2_32] : memref<36xf32, #tpu.memory_space<smem>>
    %86 = vector.broadcast %85 : f32 to vector<2x256xf32>
    %87 = arith.mulf %84, %86 : vector<2x256xf32>
    %c0_33 = arith.constant 0 : index
    %c1_34 = arith.constant 1 : index
    %c0_35 = arith.constant 0 : index
    %88 = vector.load %arg1[%c0_33, %c1_34, %c0_35] : memref<2x4x256xf32, #tpu.memory_space<vmem>>, vector<2x1x256xf32>
    %89 = vector.shape_cast %88 : vector<2x1x256xf32> to vector<2x256xf32>
    %c11 = arith.constant 11 : index
    %90 = memref.load %arg2[%c11] : memref<36xf32, #tpu.memory_space<smem>>
    %91 = vector.broadcast %90 : f32 to vector<2x256xf32>
    %92 = arith.mulf %89, %91 : vector<2x256xf32>
    %93 = arith.addf %87, %92 : vector<2x256xf32>
    %c0_36 = arith.constant 0 : index
    %c2_37 = arith.constant 2 : index
    %c0_38 = arith.constant 0 : index
    %94 = vector.load %arg1[%c0_36, %c2_37, %c0_38] : memref<2x4x256xf32, #tpu.memory_space<vmem>>, vector<2x1x256xf32>
    %95 = vector.shape_cast %94 : vector<2x1x256xf32> to vector<2x256xf32>
    %c20 = arith.constant 20 : index
    %96 = memref.load %arg2[%c20] : memref<36xf32, #tpu.memory_space<smem>>
    %97 = vector.broadcast %96 : f32 to vector<2x256xf32>
    %98 = arith.mulf %95, %97 : vector<2x256xf32>
    %99 = arith.addf %93, %98 : vector<2x256xf32>
    %c0_39 = arith.constant 0 : index
    %c3_40 = arith.constant 3 : index
    %c0_41 = arith.constant 0 : index
    %100 = vector.load %arg1[%c0_39, %c3_40, %c0_41] : memref<2x4x256xf32, #tpu.memory_space<vmem>>, vector<2x1x256xf32>
    %101 = vector.shape_cast %100 : vector<2x1x256xf32> to vector<2x256xf32>
    %c29 = arith.constant 29 : index
    %102 = memref.load %arg2[%c29] : memref<36xf32, #tpu.memory_space<smem>>
    %103 = vector.broadcast %102 : f32 to vector<2x256xf32>
    %104 = arith.mulf %101, %103 : vector<2x256xf32>
    %105 = arith.addf %99, %104 : vector<2x256xf32>
    %c15_i32_42 = arith.constant 15 : i32
    %106 = tpu.dynamic_rotate %105 by %c15_i32_42 dim 1 : vector<2x256xf32>, i32 -> vector<2x256xf32>
    %107 = arith.andi %18, %24 : vector<1x256xi1>
    %cst_43 = arith.constant 0.000000e+00 : f32
    %108 = vector.shape_cast %107 : vector<1x256xi1> to vector<1x256xi1>
    %109 = vector.broadcast %108 : vector<1x256xi1> to vector<2x256xi1>
    %110 = vector.broadcast %cst_43 : f32 to vector<2x256xf32>
    %111 = arith.select %109, %106, %110 : vector<2x256xi1>, vector<2x256xf32>
    %112 = arith.addf %82, %111 : vector<2x256xf32>
    %c0_44 = arith.constant 0 : index
    %c0_45 = arith.constant 0 : index
    %c0_46 = arith.constant 0 : index
    %113 = vector.load %arg1[%c0_44, %c0_45, %c0_46] : memref<2x4x256xf32, #tpu.memory_space<vmem>>, vector<2x1x256xf32>
    %114 = vector.shape_cast %113 : vector<2x1x256xf32> to vector<2x256xf32>
    %c3_47 = arith.constant 3 : index
    %115 = memref.load %arg2[%c3_47] : memref<36xf32, #tpu.memory_space<smem>>
    %116 = vector.broadcast %115 : f32 to vector<2x256xf32>
    %117 = arith.mulf %114, %116 : vector<2x256xf32>
    %c0_48 = arith.constant 0 : index
    %c1_49 = arith.constant 1 : index
    %c0_50 = arith.constant 0 : index
    %118 = vector.load %arg1[%c0_48, %c1_49, %c0_50] : memref<2x4x256xf32, #tpu.memory_space<vmem>>, vector<2x1x256xf32>
    %119 = vector.shape_cast %118 : vector<2x1x256xf32> to vector<2x256xf32>
    %c12 = arith.constant 12 : index
    %120 = memref.load %arg2[%c12] : memref<36xf32, #tpu.memory_space<smem>>
    %121 = vector.broadcast %120 : f32 to vector<2x256xf32>
    %122 = arith.mulf %119, %121 : vector<2x256xf32>
    %123 = arith.addf %117, %122 : vector<2x256xf32>
    %c0_51 = arith.constant 0 : index
    %c2_52 = arith.constant 2 : index
    %c0_53 = arith.constant 0 : index
    %124 = vector.load %arg1[%c0_51, %c2_52, %c0_53] : memref<2x4x256xf32, #tpu.memory_space<vmem>>, vector<2x1x256xf32>
    %125 = vector.shape_cast %124 : vector<2x1x256xf32> to vector<2x256xf32>
    %c21 = arith.constant 21 : index
    %126 = memref.load %arg2[%c21] : memref<36xf32, #tpu.memory_space<smem>>
    %127 = vector.broadcast %126 : f32 to vector<2x256xf32>
    %128 = arith.mulf %125, %127 : vector<2x256xf32>
    %129 = arith.addf %123, %128 : vector<2x256xf32>
    %c0_54 = arith.constant 0 : index
    %c3_55 = arith.constant 3 : index
    %c0_56 = arith.constant 0 : index
    %130 = vector.load %arg1[%c0_54, %c3_55, %c0_56] : memref<2x4x256xf32, #tpu.memory_space<vmem>>, vector<2x1x256xf32>
    %131 = vector.shape_cast %130 : vector<2x1x256xf32> to vector<2x256xf32>
    %c30 = arith.constant 30 : index
    %132 = memref.load %arg2[%c30] : memref<36xf32, #tpu.memory_space<smem>>
    %133 = vector.broadcast %132 : f32 to vector<2x256xf32>
    %134 = arith.mulf %131, %133 : vector<2x256xf32>
    %135 = arith.addf %129, %134 : vector<2x256xf32>
    %c1_i32_57 = arith.constant 1 : i32
    %136 = tpu.dynamic_rotate %135 by %c1_i32_57 dim 1 : vector<2x256xf32>, i32 -> vector<2x256xf32>
    %cst_58 = arith.constant 0.000000e+00 : f32
    %137 = vector.shape_cast %22 : vector<1x256xi1> to vector<1x256xi1>
    %138 = vector.broadcast %137 : vector<1x256xi1> to vector<2x256xi1>
    %139 = vector.broadcast %cst_58 : f32 to vector<2x256xf32>
    %140 = arith.select %138, %136, %139 : vector<2x256xi1>, vector<2x256xf32>
    %141 = arith.addf %112, %140 : vector<2x256xf32>
    %c0_59 = arith.constant 0 : index
    %c0_60 = arith.constant 0 : index
    %c0_61 = arith.constant 0 : index
    %142 = vector.load %arg1[%c0_59, %c0_60, %c0_61] : memref<2x4x256xf32, #tpu.memory_space<vmem>>, vector<2x1x256xf32>
    %143 = vector.shape_cast %142 : vector<2x1x256xf32> to vector<2x256xf32>
    %c4 = arith.constant 4 : index
    %144 = memref.load %arg2[%c4] : memref<36xf32, #tpu.memory_space<smem>>
    %145 = vector.broadcast %144 : f32 to vector<2x256xf32>
    %146 = arith.mulf %143, %145 : vector<2x256xf32>
    %c0_62 = arith.constant 0 : index
    %c1_63 = arith.constant 1 : index
    %c0_64 = arith.constant 0 : index
    %147 = vector.load %arg1[%c0_62, %c1_63, %c0_64] : memref<2x4x256xf32, #tpu.memory_space<vmem>>, vector<2x1x256xf32>
    %148 = vector.shape_cast %147 : vector<2x1x256xf32> to vector<2x256xf32>
    %c13 = arith.constant 13 : index
    %149 = memref.load %arg2[%c13] : memref<36xf32, #tpu.memory_space<smem>>
    %150 = vector.broadcast %149 : f32 to vector<2x256xf32>
    %151 = arith.mulf %148, %150 : vector<2x256xf32>
    %152 = arith.addf %146, %151 : vector<2x256xf32>
    %c0_65 = arith.constant 0 : index
    %c2_66 = arith.constant 2 : index
    %c0_67 = arith.constant 0 : index
    %153 = vector.load %arg1[%c0_65, %c2_66, %c0_67] : memref<2x4x256xf32, #tpu.memory_space<vmem>>, vector<2x1x256xf32>
    %154 = vector.shape_cast %153 : vector<2x1x256xf32> to vector<2x256xf32>
    %c22 = arith.constant 22 : index
    %155 = memref.load %arg2[%c22] : memref<36xf32, #tpu.memory_space<smem>>
    %156 = vector.broadcast %155 : f32 to vector<2x256xf32>
    %157 = arith.mulf %154, %156 : vector<2x256xf32>
    %158 = arith.addf %152, %157 : vector<2x256xf32>
    %c0_68 = arith.constant 0 : index
    %c3_69 = arith.constant 3 : index
    %c0_70 = arith.constant 0 : index
    %159 = vector.load %arg1[%c0_68, %c3_69, %c0_70] : memref<2x4x256xf32, #tpu.memory_space<vmem>>, vector<2x1x256xf32>
    %160 = vector.shape_cast %159 : vector<2x1x256xf32> to vector<2x256xf32>
    %c31 = arith.constant 31 : index
    %161 = memref.load %arg2[%c31] : memref<36xf32, #tpu.memory_space<smem>>
    %162 = vector.broadcast %161 : f32 to vector<2x256xf32>
    %163 = arith.mulf %160, %162 : vector<2x256xf32>
    %164 = arith.addf %158, %163 : vector<2x256xf32>
    %165 = arith.addf %141, %164 : vector<2x256xf32>
    %c0_71 = arith.constant 0 : index
    %c0_72 = arith.constant 0 : index
    %c0_73 = arith.constant 0 : index
    %166 = vector.load %arg1[%c0_71, %c0_72, %c0_73] : memref<2x4x256xf32, #tpu.memory_space<vmem>>, vector<2x1x256xf32>
    %167 = vector.shape_cast %166 : vector<2x1x256xf32> to vector<2x256xf32>
    %c5 = arith.constant 5 : index
    %168 = memref.load %arg2[%c5] : memref<36xf32, #tpu.memory_space<smem>>
    %169 = vector.broadcast %168 : f32 to vector<2x256xf32>
    %170 = arith.mulf %167, %169 : vector<2x256xf32>
    %c0_74 = arith.constant 0 : index
    %c1_75 = arith.constant 1 : index
    %c0_76 = arith.constant 0 : index
    %171 = vector.load %arg1[%c0_74, %c1_75, %c0_76] : memref<2x4x256xf32, #tpu.memory_space<vmem>>, vector<2x1x256xf32>
    %172 = vector.shape_cast %171 : vector<2x1x256xf32> to vector<2x256xf32>
    %c14 = arith.constant 14 : index
    %173 = memref.load %arg2[%c14] : memref<36xf32, #tpu.memory_space<smem>>
    %174 = vector.broadcast %173 : f32 to vector<2x256xf32>
    %175 = arith.mulf %172, %174 : vector<2x256xf32>
    %176 = arith.addf %170, %175 : vector<2x256xf32>
    %c0_77 = arith.constant 0 : index
    %c2_78 = arith.constant 2 : index
    %c0_79 = arith.constant 0 : index
    %177 = vector.load %arg1[%c0_77, %c2_78, %c0_79] : memref<2x4x256xf32, #tpu.memory_space<vmem>>, vector<2x1x256xf32>
    %178 = vector.shape_cast %177 : vector<2x1x256xf32> to vector<2x256xf32>
    %c23 = arith.constant 23 : index
    %179 = memref.load %arg2[%c23] : memref<36xf32, #tpu.memory_space<smem>>
    %180 = vector.broadcast %179 : f32 to vector<2x256xf32>
    %181 = arith.mulf %178, %180 : vector<2x256xf32>
    %182 = arith.addf %176, %181 : vector<2x256xf32>
    %c0_80 = arith.constant 0 : index
    %c3_81 = arith.constant 3 : index
    %c0_82 = arith.constant 0 : index
    %183 = vector.load %arg1[%c0_80, %c3_81, %c0_82] : memref<2x4x256xf32, #tpu.memory_space<vmem>>, vector<2x1x256xf32>
    %184 = vector.shape_cast %183 : vector<2x1x256xf32> to vector<2x256xf32>
    %c32 = arith.constant 32 : index
    %185 = memref.load %arg2[%c32] : memref<36xf32, #tpu.memory_space<smem>>
    %186 = vector.broadcast %185 : f32 to vector<2x256xf32>
    %187 = arith.mulf %184, %186 : vector<2x256xf32>
    %188 = arith.addf %182, %187 : vector<2x256xf32>
    %c255_i32 = arith.constant 255 : i32
    %189 = tpu.dynamic_rotate %188 by %c255_i32 dim 1 : vector<2x256xf32>, i32 -> vector<2x256xf32>
    %cst_83 = arith.constant 0.000000e+00 : f32
    %190 = vector.shape_cast %24 : vector<1x256xi1> to vector<1x256xi1>
    %191 = vector.broadcast %190 : vector<1x256xi1> to vector<2x256xi1>
    %192 = vector.broadcast %cst_83 : f32 to vector<2x256xf32>
    %193 = arith.select %191, %189, %192 : vector<2x256xi1>, vector<2x256xf32>
    %194 = arith.addf %165, %193 : vector<2x256xf32>
    %c0_84 = arith.constant 0 : index
    %c0_85 = arith.constant 0 : index
    %c0_86 = arith.constant 0 : index
    %195 = vector.load %arg1[%c0_84, %c0_85, %c0_86] : memref<2x4x256xf32, #tpu.memory_space<vmem>>, vector<2x1x256xf32>
    %196 = vector.shape_cast %195 : vector<2x1x256xf32> to vector<2x256xf32>
    %c6 = arith.constant 6 : index
    %197 = memref.load %arg2[%c6] : memref<36xf32, #tpu.memory_space<smem>>
    %198 = vector.broadcast %197 : f32 to vector<2x256xf32>
    %199 = arith.mulf %196, %198 : vector<2x256xf32>
    %c0_87 = arith.constant 0 : index
    %c1_88 = arith.constant 1 : index
    %c0_89 = arith.constant 0 : index
    %200 = vector.load %arg1[%c0_87, %c1_88, %c0_89] : memref<2x4x256xf32, #tpu.memory_space<vmem>>, vector<2x1x256xf32>
    %201 = vector.shape_cast %200 : vector<2x1x256xf32> to vector<2x256xf32>
    %c15 = arith.constant 15 : index
    %202 = memref.load %arg2[%c15] : memref<36xf32, #tpu.memory_space<smem>>
    %203 = vector.broadcast %202 : f32 to vector<2x256xf32>
    %204 = arith.mulf %201, %203 : vector<2x256xf32>
    %205 = arith.addf %199, %204 : vector<2x256xf32>
    %c0_90 = arith.constant 0 : index
    %c2_91 = arith.constant 2 : index
    %c0_92 = arith.constant 0 : index
    %206 = vector.load %arg1[%c0_90, %c2_91, %c0_92] : memref<2x4x256xf32, #tpu.memory_space<vmem>>, vector<2x1x256xf32>
    %207 = vector.shape_cast %206 : vector<2x1x256xf32> to vector<2x256xf32>
    %c24 = arith.constant 24 : index
    %208 = memref.load %arg2[%c24] : memref<36xf32, #tpu.memory_space<smem>>
    %209 = vector.broadcast %208 : f32 to vector<2x256xf32>
    %210 = arith.mulf %207, %209 : vector<2x256xf32>
    %211 = arith.addf %205, %210 : vector<2x256xf32>
    %c0_93 = arith.constant 0 : index
    %c3_94 = arith.constant 3 : index
    %c0_95 = arith.constant 0 : index
    %212 = vector.load %arg1[%c0_93, %c3_94, %c0_95] : memref<2x4x256xf32, #tpu.memory_space<vmem>>, vector<2x1x256xf32>
    %213 = vector.shape_cast %212 : vector<2x1x256xf32> to vector<2x256xf32>
    %c33 = arith.constant 33 : index
    %214 = memref.load %arg2[%c33] : memref<36xf32, #tpu.memory_space<smem>>
    %215 = vector.broadcast %214 : f32 to vector<2x256xf32>
    %216 = arith.mulf %213, %215 : vector<2x256xf32>
    %217 = arith.addf %211, %216 : vector<2x256xf32>
    %c241_i32 = arith.constant 241 : i32
    %218 = tpu.dynamic_rotate %217 by %c241_i32 dim 1 : vector<2x256xf32>, i32 -> vector<2x256xf32>
    %219 = arith.andi %20, %22 : vector<1x256xi1>
    %cst_96 = arith.constant 0.000000e+00 : f32
    %220 = vector.shape_cast %219 : vector<1x256xi1> to vector<1x256xi1>
    %221 = vector.broadcast %220 : vector<1x256xi1> to vector<2x256xi1>
    %222 = vector.broadcast %cst_96 : f32 to vector<2x256xf32>
    %223 = arith.select %221, %218, %222 : vector<2x256xi1>, vector<2x256xf32>
    %224 = arith.addf %194, %223 : vector<2x256xf32>
    %c0_97 = arith.constant 0 : index
    %c0_98 = arith.constant 0 : index
    %c0_99 = arith.constant 0 : index
    %225 = vector.load %arg1[%c0_97, %c0_98, %c0_99] : memref<2x4x256xf32, #tpu.memory_space<vmem>>, vector<2x1x256xf32>
    %226 = vector.shape_cast %225 : vector<2x1x256xf32> to vector<2x256xf32>
    %c7 = arith.constant 7 : index
    %227 = memref.load %arg2[%c7] : memref<36xf32, #tpu.memory_space<smem>>
    %228 = vector.broadcast %227 : f32 to vector<2x256xf32>
    %229 = arith.mulf %226, %228 : vector<2x256xf32>
    %c0_100 = arith.constant 0 : index
    %c1_101 = arith.constant 1 : index
    %c0_102 = arith.constant 0 : index
    %230 = vector.load %arg1[%c0_100, %c1_101, %c0_102] : memref<2x4x256xf32, #tpu.memory_space<vmem>>, vector<2x1x256xf32>
    %231 = vector.shape_cast %230 : vector<2x1x256xf32> to vector<2x256xf32>
    %c16 = arith.constant 16 : index
    %232 = memref.load %arg2[%c16] : memref<36xf32, #tpu.memory_space<smem>>
    %233 = vector.broadcast %232 : f32 to vector<2x256xf32>
    %234 = arith.mulf %231, %233 : vector<2x256xf32>
    %235 = arith.addf %229, %234 : vector<2x256xf32>
    %c0_103 = arith.constant 0 : index
    %c2_104 = arith.constant 2 : index
    %c0_105 = arith.constant 0 : index
    %236 = vector.load %arg1[%c0_103, %c2_104, %c0_105] : memref<2x4x256xf32, #tpu.memory_space<vmem>>, vector<2x1x256xf32>
    %237 = vector.shape_cast %236 : vector<2x1x256xf32> to vector<2x256xf32>
    %c25 = arith.constant 25 : index
    %238 = memref.load %arg2[%c25] : memref<36xf32, #tpu.memory_space<smem>>
    %239 = vector.broadcast %238 : f32 to vector<2x256xf32>
    %240 = arith.mulf %237, %239 : vector<2x256xf32>
    %241 = arith.addf %235, %240 : vector<2x256xf32>
    %c0_106 = arith.constant 0 : index
    %c3_107 = arith.constant 3 : index
    %c0_108 = arith.constant 0 : index
    %242 = vector.load %arg1[%c0_106, %c3_107, %c0_108] : memref<2x4x256xf32, #tpu.memory_space<vmem>>, vector<2x1x256xf32>
    %243 = vector.shape_cast %242 : vector<2x1x256xf32> to vector<2x256xf32>
    %c34 = arith.constant 34 : index
    %244 = memref.load %arg2[%c34] : memref<36xf32, #tpu.memory_space<smem>>
    %245 = vector.broadcast %244 : f32 to vector<2x256xf32>
    %246 = arith.mulf %243, %245 : vector<2x256xf32>
    %247 = arith.addf %241, %246 : vector<2x256xf32>
    %c240_i32_109 = arith.constant 240 : i32
    %248 = tpu.dynamic_rotate %247 by %c240_i32_109 dim 1 : vector<2x256xf32>, i32 -> vector<2x256xf32>
    %cst_110 = arith.constant 0.000000e+00 : f32
    %249 = vector.shape_cast %20 : vector<1x256xi1> to vector<1x256xi1>
    %250 = vector.broadcast %249 : vector<1x256xi1> to vector<2x256xi1>
    %251 = vector.broadcast %cst_110 : f32 to vector<2x256xf32>
    %252 = arith.select %250, %248, %251 : vector<2x256xi1>, vector<2x256xf32>
    %253 = arith.addf %224, %252 : vector<2x256xf32>
    %c0_111 = arith.constant 0 : index
    %c0_112 = arith.constant 0 : index
    %c0_113 = arith.constant 0 : index
    %254 = vector.load %arg1[%c0_111, %c0_112, %c0_113] : memref<2x4x256xf32, #tpu.memory_space<vmem>>, vector<2x1x256xf32>
    %255 = vector.shape_cast %254 : vector<2x1x256xf32> to vector<2x256xf32>
    %c8 = arith.constant 8 : index
    %256 = memref.load %arg2[%c8] : memref<36xf32, #tpu.memory_space<smem>>
    %257 = vector.broadcast %256 : f32 to vector<2x256xf32>
    %258 = arith.mulf %255, %257 : vector<2x256xf32>
    %c0_114 = arith.constant 0 : index
    %c1_115 = arith.constant 1 : index
    %c0_116 = arith.constant 0 : index
    %259 = vector.load %arg1[%c0_114, %c1_115, %c0_116] : memref<2x4x256xf32, #tpu.memory_space<vmem>>, vector<2x1x256xf32>
    %260 = vector.shape_cast %259 : vector<2x1x256xf32> to vector<2x256xf32>
    %c17 = arith.constant 17 : index
    %261 = memref.load %arg2[%c17] : memref<36xf32, #tpu.memory_space<smem>>
    %262 = vector.broadcast %261 : f32 to vector<2x256xf32>
    %263 = arith.mulf %260, %262 : vector<2x256xf32>
    %264 = arith.addf %258, %263 : vector<2x256xf32>
    %c0_117 = arith.constant 0 : index
    %c2_118 = arith.constant 2 : index
    %c0_119 = arith.constant 0 : index
    %265 = vector.load %arg1[%c0_117, %c2_118, %c0_119] : memref<2x4x256xf32, #tpu.memory_space<vmem>>, vector<2x1x256xf32>
    %266 = vector.shape_cast %265 : vector<2x1x256xf32> to vector<2x256xf32>
    %c26 = arith.constant 26 : index
    %267 = memref.load %arg2[%c26] : memref<36xf32, #tpu.memory_space<smem>>
    %268 = vector.broadcast %267 : f32 to vector<2x256xf32>
    %269 = arith.mulf %266, %268 : vector<2x256xf32>
    %270 = arith.addf %264, %269 : vector<2x256xf32>
    %c0_120 = arith.constant 0 : index
    %c3_121 = arith.constant 3 : index
    %c0_122 = arith.constant 0 : index
    %271 = vector.load %arg1[%c0_120, %c3_121, %c0_122] : memref<2x4x256xf32, #tpu.memory_space<vmem>>, vector<2x1x256xf32>
    %272 = vector.shape_cast %271 : vector<2x1x256xf32> to vector<2x256xf32>
    %c35 = arith.constant 35 : index
    %273 = memref.load %arg2[%c35] : memref<36xf32, #tpu.memory_space<smem>>
    %274 = vector.broadcast %273 : f32 to vector<2x256xf32>
    %275 = arith.mulf %272, %274 : vector<2x256xf32>
    %276 = arith.addf %270, %275 : vector<2x256xf32>
    %c239_i32 = arith.constant 239 : i32
    %277 = tpu.dynamic_rotate %276 by %c239_i32 dim 1 : vector<2x256xf32>, i32 -> vector<2x256xf32>
    %278 = arith.andi %20, %24 : vector<1x256xi1>
    %cst_123 = arith.constant 0.000000e+00 : f32
    %279 = vector.shape_cast %278 : vector<1x256xi1> to vector<1x256xi1>
    %280 = vector.broadcast %279 : vector<1x256xi1> to vector<2x256xi1>
    %281 = vector.broadcast %cst_123 : f32 to vector<2x256xf32>
    %282 = arith.select %280, %277, %281 : vector<2x256xi1>, vector<2x256xf32>
    %283 = arith.addf %253, %282 : vector<2x256xf32>
    %c0_124 = arith.constant 0 : index
    %c0_125 = arith.constant 0 : index
    %c0_126 = arith.constant 0 : index
    %284 = vector.load %arg3[%c0_124, %c0_125, %c0_126] : memref<1x2x256xf32, #tpu.memory_space<vmem>>, vector<1x2x256xf32>
    %285 = vector.shape_cast %284 : vector<1x2x256xf32> to vector<2x256xf32>
    %286 = vector.shape_cast %283 : vector<2x256xf32> to vector<1x2x256xf32>
    tpu.vector_store %arg3[%c0_124, %c0_125, %c0_126], %286 {strides = array<i32>} : memref<1x2x256xf32, #tpu.memory_space<vmem>>, vector<1x2x256xf32>,
    return
  }
  func.func @transform_0(%arg0: i32) -> (i32, i32, i32) {
    %c0_i32 = arith.constant 0 : i32
    %c0_i32_0 = arith.constant 0 : i32
    %c0_i32_1 = arith.constant 0 : i32
    return %arg0, %c0_i32, %c0_i32_0 : i32, i32, i32
  }
  func.func @transform_1(%arg0: i32) -> i32 {
    %c0_i32 = arith.constant 0 : i32
    %c0_i32_0 = arith.constant 0 : i32
    return %c0_i32 : i32
  }
  func.func @transform_2(%arg0: i32) -> (i32, i32, i32) {
    %c0_i32 = arith.constant 0 : i32
    %c0_i32_0 = arith.constant 0 : i32
    %c0_i32_1 = arith.constant 0 : i32
    return %arg0, %c0_i32, %c0_i32_0 : i32, i32, i32
  }
}

</mosaic_0001>

<bundles_post_ra>
// kernel: tpu_custom_call.1
= control target key start
LH: loop header
LB: loop body
LE: loop exit
PB: predicated region body
PF: predicated region fallthrough
CT: control target
= control target key end

     0   :  { %7 = vsyncpa [#allocation3], 0  ;;  %s1147_s0 = inlined_call_operand.hbm [shape: f32[2,4,256], index: 0, kind: input, shape index: {}]   ;;  %s1148_s1 = inlined_call_operand.vmem [shape: f32[36], index: 1, kind: input, shape index: {}]   ;;  %s1149_s2 = inlined_call_operand.hbm [shape: f32[1,2,256], index: 2, kind: output, shape index: {}]  }
   0x1   :  { %8 = vsyncpa [#allocation5], 0 }
   0x2   :  { %9 = vsyncpa [#allocation4], 0  ;;  %s798_s9 = smov [#allocation2]   ;;  %s28_s13 = sshll.u32 %s1148_s1, 4  ;;  %s29_s13 = int_to_ptr.vmem [resolvable:$true] %s28_s13 }
   0x3   :  { %s15_s10 = sshll.u32 %s798_s9, 4  ;;  %s736_s16 = scalar_lea.hbm %s1147_s0, 256  ;;  %s16_s10 = int_to_ptr.vmem [resolvable:$true] %s15_s10 }
   0x4   :  { %p737_p0 = scmp.ne.s32.totalorder %s1147_s0, %s736_s16  ;;  %p740_p1 = scmp.lt.u32.totalorder %s736_s16, %s1147_s0 }
   0x6   :  { %p742_p2 = pnand %p740_p1, %p737_p0 }
   0x8   :  { %745 = shalt.err (!%p742_p2)
}
   0x9   :  { %s746_s21 = scalar_lea.vmem %s16_s10, 256  ;;  %p751_p4 = scmp.lt.s32.totalorder %s16_s10, %s16_s10 }
   0xa   :  { %p747_p3 = scmp.ne.s32.totalorder %s16_s10, %s746_s21  ;;  %p752_p5 = scmp.lt.s32.totalorder %s746_s21, %s746_s21 }
   0xc   :  { %p753_p6 = por %p752_p5, %p751_p4 }
   0xe   :  { %p754_p7 = pnand %p753_p6, %p747_p3 }
  0x10   :  { %757 = shalt.err (!%p754_p7)
}
  0x11   :  { %s799_s1 = smov 128   ;;  %s800_s22 = smov 8  }
  0x12   :  { %21 = dma.hbm_to_vmem [thread:$0]  %s1147_s0, 256, %s16_s10, [#allocation3], %s799_s1, %s799_s1, %s800_s22  }
  0x13   :  { %s758_s25 = scalar_lea.vmem %s29_s13, 16  ;;  %p763_p9 = scmp.lt.s32.totalorder %s29_s13, %s29_s13 }
  0x14   :  { %p759_p8 = scmp.ne.s32.totalorder %s29_s13, %s758_s25  ;;  %p764_p10 = scmp.lt.s32.totalorder %s758_s25, %s758_s25 }
  0x16   :  { %p765_p11 = por %p764_p10, %p763_p9 }
  0x18   :  { %p766_p12 = pnand %p765_p11, %p759_p8 }
  0x1a   :  { %769 = shalt.err (!%p766_p12)
}
  0x1b   :  { %s801_s26 = smov [#allocation6]  }
  0x1c   :  { %31 = dma.vmem_to_smem %s29_s13, 16, %s801_s26, [#allocation5]  }
  0x1d   :  { %792 = dma.done.wait [#allocation3], 256  }
  0x1e   :  { %793 = vsyncadd [#allocation3], 4294967040 }
  0x1f   :  { %794 = dma.done.wait [#allocation5], 16  }
  0x20   :  { %795 = vsyncadd [#allocation5], 4294967280 }
  0x21   :  { %38 = sfence }
  0x22   :  { %v39_v0 = vlaneseq  ;;  %s689_s27 = sld [smem:[#allocation6 + $0x1]]  ;;  %v802_v1 = vmov 1966171168   ;;  %s690_s0 = sld [smem:[#allocation6 + $0xa]] }
  0x23   :  { %v115_v2 = vunpack.c.l.s4 %v802_v1  ;;  %s691_s28 = sld [smem:[#allocation6 + $0x13]]  ;;  %v842_v3 = vld [vmem:[#allocation2] ss:$4 sm:$0x3]  ;;  %s847_s29 = sld [smem:[#allocation6 + $0x1c]] }
  0x24   :  { %v844_v4 = vld [vmem:[#allocation2 + $0x8] ss:$4 sm:$0x3]  ;;  %v118_v5 = vshrl.u32 %v39_v0, 7  ;;  %s849_s30 = sld [smem:[#allocation6]]  ;;  %s855_s3 = sld [smem:[#allocation6 + $0x9]] }
  0x25   :  { %v851_v6 = vld [vmem:[#allocation2 + $0x1] ss:$4 sm:$0x3]  ;;  %v853_v7 = vld [vmem:[#allocation2 + $0x9] ss:$4 sm:$0x3]  ;;  %v116_v8 = vunpack.c.0.s8 %v115_v2 }
  0x26   :  { %s857_s4 = sld [smem:[#allocation6 + $0x12]]  ;;  %v859_v9 = vld [vmem:[#allocation2 + $0x2] ss:$4 sm:$0x3]  ;;  %s863_s5 = sld [smem:[#allocation6 + $0x1b]] }
  0x27   :  { %v861_v10 = vld [vmem:[#allocation2 + $0xa] ss:$4 sm:$0x3]  ;;  %s865_s6 = sld [smem:[#allocation6 + $0x2]]  ;;  %v869_v12 = vsub.s32 %v116_v8, %v118_v5  ;;  %s875_s7 = sld [smem:[#allocation6 + $0xb]] }
  0x28   :  { %v867_v11 = vld [vmem:[#allocation2 + $0x3] ss:$4 sm:$0x3]  ;;  %v154_v13 = vstv %s689_s27  ;;  %v871_v14 = vld [vmem:[#allocation2 + $0xb] ss:$4 sm:$0x3]  ;;  %v158_v17 = vstv %s690_s0 }
  0x29   :  { %v155_v15 = vmul.f32 %v154_v13, %v842_v3  ;;  %v156_v16 = vmul.f32 %v154_v13, %v844_v4  ;;  %v164_v18 = vstv %s691_s28  ;;  %v159_v19 = vmul.f32 %v158_v17, %v851_v6  ;;  %s881_s8 = sld [smem:[#allocation6 + $0x14]]  ;;  %s883_s9 = sld [smem:[#allocation6 + $0x1d]] }
  0x2a   :  { %v160_v20 = vmul.f32 %v158_v17, %v853_v7  ;;  %v165_v21 = vmul.f32 %v164_v18, %v859_v9  ;;  %v166_v22 = vmul.f32 %v164_v18, %v861_v10  ;;  %v170_v23 = vstv %s847_s29  ;;  %s897_s10 = sld [smem:[#allocation6 + $0x3]]  ;;  %s899_s11 = sld [smem:[#allocation6 + $0xc]] }
  0x2b   :  { %v78_v24 = vstv %s849_s30  ;;  %v86_v25 = vstv %s855_s3  ;;  %v161_v27 = vadd.f32 %v159_v19, %v155_v15  ;;  %v171_v29 = vmul.f32 %v170_v23, %v867_v11  ;;  %s910_s12 = sld [smem:[#allocation6 + $0x15]]  ;;  %s912_s13 = sld [smem:[#allocation6 + $0x1e]] }
  0x2c   :  { %v96_v26 = vstv %s857_s4  ;;  %v162_v28 = vadd.f32 %v160_v20, %v156_v16  ;;  %v172_v30 = vmul.f32 %v170_v23, %v871_v14  ;;  %v79_v31 = vmul.f32 %v78_v24, %v842_v3  ;;  %s920_s14 = sld [smem:[#allocation6 + $0x5]]  ;;  %s922_s15 = sld [smem:[#allocation6 + $0xe]] }
  0x2d   :  { %v80_v32 = vmul.f32 %v78_v24, %v844_v4  ;;  %v87_v33 = vmul.f32 %v86_v25, %v851_v6  ;;  %v88_v34 = vmul.f32 %v86_v25, %v853_v7  ;;  %v167_v35 = vadd.f32 %v165_v21, %v161_v27  ;;  %s928_s16 = sld [smem:[#allocation6 + $0x17]]  ;;  %s803_s17 = smov 16  }
  0x2e   :  { %v168_v36 = vadd.f32 %v166_v22, %v162_v28  ;;  %v97_v37 = vmul.f32 %v96_v26, %v859_v9  ;;  %v98_v38 = vmul.f32 %v96_v26, %v861_v10  ;;  %v106_v41 = vstv %s863_s5  ;;  %s937_s18 = sld [smem:[#allocation6 + $0x20]]  ;;  %s939_s19 = sld [smem:[#allocation6 + $0x6]] }
  0x2f   :  { %v89_v39 = vadd.f32 %v87_v33, %v79_v31  ;;  %v90_v40 = vadd.f32 %v88_v34, %v80_v32  ;;  %v218_v42 = vstv %s865_s6  ;;  %v173_v43 = vadd.f32 %v171_v29, %v167_v35  ;;  %s804_s20 = smov 17   ;;  %s947_s21 = sld [smem:[#allocation6 + $0xf]] }
  0x30   :  { %v174_v44 = vadd.f32 %v172_v30, %v168_v36  ;;  %v107_v45 = vmul.f32 %v106_v41, %v867_v11  ;;  %v108_v46 = vmul.f32 %v106_v41, %v871_v14  ;;  %v219_v49 = vmul.f32 %v218_v42, %v842_v3  ;;  %s957_s1 = sld [smem:[#allocation6 + $0x18]]  ;;  %s959_s22 = sld [smem:[#allocation6 + $0x21]] }
  0x31   :  { %v99_v47 = vadd.f32 %v97_v37, %v89_v39  ;;  %v100_v48 = vadd.f32 %v98_v38, %v90_v40  ;;  %v220_v50 = vmul.f32 %v218_v42, %v844_v4  ;;  %v222_v52 = vstv %s875_s7  ;;  %s968_s23 = sld [smem:[#allocation6 + $0x7]]  ;;  %s970_s24 = sld [smem:[#allocation6 + $0x10]] }
  0x32   :  { %v177_v51 = vcombine.low %v173_v43, %v174_v44  ;;  %v228_v53 = vstv %s881_s8  ;;  %v234_v54 = vstv %s883_s9  ;;  %v223_v57 = vmul.f32 %v222_v52, %v851_v6  ;;  %s805_s25 = smov 15   ;;  %s981_s26 = sld [smem:[#allocation6 + $0x19]] }
  0x33   :  { %v109_v55 = vadd.f32 %v107_v45, %v99_v47  ;;  %v110_v56 = vadd.f32 %v108_v46, %v100_v48  ;;  %v224_v58 = vmul.f32 %v222_v52, %v853_v7  ;;  %v229_v60 = vmul.f32 %v228_v53, %v859_v9  ;;  %s983_s27 = sld [smem:[#allocation6 + $0x22]]  ;;  %s990_s0 = sld [smem:[#allocation6 + $0x8]] }
  0x34   :  { %v184_v59 = vrot.slane %v177_v51, %v869_v12  ;;  %v230_v61 = vmul.f32 %v228_v53, %v861_v10  ;;  %v235_v62 = vmul.f32 %v234_v54, %v867_v11  ;;  %v225_v1 = vadd.f32 %v223_v57, %v219_v49  ;;  %s993_s28 = sld [smem:[#allocation6 + $0x11]]  ;;  %s806_s29 = smov 1  }
  0x35   :  { %v113_v63 = vcombine.low %v109_v55, %v110_v56  ;;  %v226_v2 = vadd.f32 %v224_v58, %v220_v50  ;;  %v236_v5 = vmul.f32 %v234_v54, %v871_v14  ;;  %v284_v15 = vstv %s897_s10  ;;  %s999_s30 = sld [smem:[#allocation6 + $0x1a]]  ;;  %s1001_s3 = sld [smem:[#allocation6 + $0x23]] }
  0x36   :  { %v192_v8 = vrot.slane %v184_v59, %v869_v12  ;;  %v185_v13 = vcombine.high %v184_v59, %v184_v59  ;;  %v288_v16 = vstv %s899_s11  ;;  %v231_v18 = vadd.f32 %v229_v60, %v225_v1  ;;  %s1021_s4 = sld [smem:[#allocation6 + $0x4]]  ;;  %s807_s5 = smov 127  }
  0x37   :  { %v120_v17 = vrot.slane %v113_v63, %v869_v12  ;;  %v232_v19 = vadd.f32 %v230_v61, %v226_v2  ;;  %v285_v20 = vmul.f32 %v284_v15, %v842_v3  ;;  %v286_v22 = vmul.f32 %v284_v15, %v844_v4  ;;  %s702_s6 = sld [smem:[#allocation6 + $0xd]]  ;;  %s703_s7 = sld [smem:[#allocation6 + $0x16]] }
  0x38   :  { %202 = vrot.lane.b32.xlu1 %v192_v8, %s803_s17  ;;  %v199_v21 = vrot.slane %v185_v13, %v869_v12  ;;  %v289_v23 = vmul.f32 %v288_v16, %v851_v6  ;;  %v290_v24 = vmul.f32 %v288_v16, %v853_v7  ;;  %v237_v27 = vadd.f32 %v235_v62, %v231_v18  ;;  %s808_s8 = smov 113   ;;  %s704_s9 = sld [smem:[#allocation6 + $0x1f]] }
  0x39   :  { %v128_v25 = vrot.slane %v120_v17, %v869_v12  ;;  %v121_v26 = vcombine.high %v120_v17, %v120_v17  ;;  %v238_v28 = vadd.f32 %v236_v5, %v232_v19  ;;  %v294_v31 = vstv %s910_s12  ;;  %s809_s10 = smov 112   ;;  %s810_s11 = smov 111  }
  0x3a   :  { %v291_v29 = vadd.f32 %v289_v23, %v285_v20  ;;  %v292_v30 = vadd.f32 %v290_v24, %v286_v22  ;;  %v300_v32 = vstv %s912_s13  ;;  %v295_v34 = vmul.f32 %v294_v31, %v859_v9  ;;  %s811_s12 = smov [#allocation7]  }
  0x3b   :  { %138 = vrot.lane.b32.xlu0 %v128_v25, %s804_s20  ;;  %v241_v33 = vcombine.low %v237_v27, %v238_v28  ;;  %v296_v35 = vmul.f32 %v294_v31, %v861_v10  ;;  %v301_v36 = vmul.f32 %v300_v32, %v867_v11  ;;  %v302_v37 = vmul.f32 %v300_v32, %v871_v14  ;;  %s676_s13 = sshll.u32 %s811_s12, 4  ;;  %s677_s13 = int_to_ptr.vmem [resolvable:$true] %s676_s13 }
  0x3c   :  { %204 = vrot.lane.b32.xlu1 %v199_v21, %s803_s17  ;;  %v951_v38 = vrot.slane %v121_v26, %v869_v12  ;;  %v399_v39 = vstv %s920_s14  ;;  %v403_v40 = vstv %s922_s15  ;;  %v297_v42 = vadd.f32 %v295_v34, %v291_v29  ;;  %s770_s14 = scalar_lea.vmem %s677_s13, 64  ;;  %p775_p0 = scmp.lt.s32.totalorder %s677_s13, %s677_s13 }
  0x3d   :  { %v248_v41 = vrot.slane %v241_v33, %v869_v12  ;;  %v298_v43 = vadd.f32 %v296_v35, %v292_v30  ;;  %v400_v44 = vmul.f32 %v399_v39, %v842_v3  ;;  %v401_v45 = vmul.f32 %v399_v39, %v844_v4  ;;  %p771_p13 = scmp.ne.s32.totalorder %s677_s13, %s770_s14  ;;  %p776_p1 = scmp.lt.s32.totalorder %s770_s14, %s770_s14 }
  0x3e   :  { %v404_v46 = vmul.f32 %v403_v40, %v851_v6  ;;  %v405_v47 = vmul.f32 %v403_v40, %v853_v7  ;;  %v409_v48 = vstv %s928_s16  ;;  %v303_v51 = vadd.f32 %v301_v36, %v297_v42 }
  0x3f   :  { %v256_v49 = vrot.slane %v248_v41, %v869_v12  ;;  %v249_v50 = vcombine.high %v248_v41, %v248_v41  ;;  %v304_v52 = vadd.f32 %v302_v37, %v298_v43  ;;  %v410_v55 = vmul.f32 %v409_v48, %v859_v9  ;;  %p777_p2 = por %p776_p1, %p775_p0 }
  0x40   :  { %v406_v53 = vadd.f32 %v404_v46, %v400_v44  ;;  %v407_v54 = vadd.f32 %v405_v47, %v401_v45  ;;  %v411_v56 = vmul.f32 %v409_v48, %v861_v10  ;;  %v415_v59 = vstv %s937_s18 }
  0x41   :  { %266 = vrot.lane.b32.xlu0 %v256_v49, %s805_s25  ;;  %v263_v57 = vrot.slane %v249_v50, %v869_v12  ;;  %v307_v58 = vcombine.low %v303_v51, %v304_v52  ;;  %v463_v60 = vstv %s939_s19  ;;  %v416_v63 = vmul.f32 %v415_v59, %v867_v11  ;;  %p778_p3 = pnand %p777_p2, %p771_p13 }
  0x42   :  { %v412_v61 = vadd.f32 %v410_v55, %v406_v53  ;;  %v413_v62 = vadd.f32 %v411_v56, %v407_v54  ;;  %v417_v1 = vmul.f32 %v415_v59, %v871_v14  ;;  %v464_v5 = vmul.f32 %v463_v60, %v842_v3 }
  0x43   :  { %268 = vrot.lane.b32.xlu1 %v263_v57, %s805_s25  ;;  %v314_v2 = vrot.slane %v307_v58, %v869_v12  ;;  %v465_v8 = vmul.f32 %v463_v60, %v844_v4  ;;  %v467_v13 = vstv %s947_s21  ;;  %v473_v21 = vstv %s957_s1 }
  0x44   :  { %v418_v15 = vadd.f32 %v416_v63, %v412_v61  ;;  %v419_v16 = vadd.f32 %v417_v1, %v413_v62  ;;  %v468_v17 = vmul.f32 %v467_v13, %v851_v6  ;;  %v469_v18 = vmul.f32 %v467_v13, %v853_v7 }
  0x45   :  { %v322_v19 = vrot.slane %v314_v2, %v869_v12  ;;  %v315_v20 = vcombine.high %v314_v2, %v314_v2  ;;  %v479_v22 = vstv %s959_s22  ;;  %v474_v26 = vmul.f32 %v473_v21, %v859_v9 }
  0x46   :  { %v422_v23 = vcombine.low %v418_v15, %v419_v16  ;;  %v470_v24 = vadd.f32 %v468_v17, %v464_v5  ;;  %v471_v25 = vadd.f32 %v469_v18, %v465_v8  ;;  %v475_v28 = vmul.f32 %v473_v21, %v861_v10 }
  0x47   :  { %332 = vrot.lane.b32.xlu0 %v322_v19, %s806_s29  ;;  %v329_v27 = vrot.slane %v315_v20, %v869_v12  ;;  %v480_v29 = vmul.f32 %v479_v22, %v867_v11  ;;  %v481_v30 = vmul.f32 %v479_v22, %v871_v14  ;;  %v529_v33 = vstv %s968_s23 }
  0x48   :  { %v429_v31 = vrot.slane %v422_v23, %v869_v12  ;;  %v476_v32 = vadd.f32 %v474_v26, %v470_v24  ;;  %v533_v34 = vstv %s970_s24  ;;  %v477_v35 = vadd.f32 %v475_v28, %v471_v25 }
  0x49   :  { %334 = vrot.lane.b32.xlu1 %v329_v27, %s806_s29  ;;  %v530_v36 = vmul.f32 %v529_v33, %v842_v3  ;;  %v531_v37 = vmul.f32 %v529_v33, %v844_v4  ;;  %v534_v39 = vmul.f32 %v533_v34, %v851_v6  ;;  %v535_v43 = vmul.f32 %v533_v34, %v853_v7 }
  0x4a   :  { %v430_v40 = vcombine.high %v429_v31, %v429_v31  ;;  %v437_v41 = vrot.slane %v429_v31, %v869_v12  ;;  %v482_v42 = vadd.f32 %v480_v29, %v476_v32  ;;  %v483_v44 = vadd.f32 %v481_v30, %v477_v35 }
  0x4b   :  { %140 = vrot.lane.b32.xlu0 %v951_v38, %s804_s20  ;;  %v536_v45 = vadd.f32 %v534_v39, %v530_v36  ;;  %v539_v46 = vstv %s981_s26  ;;  %v545_v47 = vstv %s983_s27  ;;  %v537_v49 = vadd.f32 %v535_v43, %v531_v37 }
  0x4c   :  { %v444_v48 = vrot.slane %v430_v40, %v869_v12  ;;  %v540_v50 = vmul.f32 %v539_v46, %v859_v9  ;;  %v541_v51 = vmul.f32 %v539_v46, %v861_v10  ;;  %v486_v52 = vcombine.low %v482_v42, %v483_v44 }
  0x4d   :  { %v546_v53 = vmul.f32 %v545_v47, %v867_v11  ;;  %v547_v54 = vmul.f32 %v545_v47, %v871_v14  ;;  %v593_v38 = vstv %s990_s0  ;;  %v597_v60 = vstv %s993_s28 }
  0x4e   :  { %449 = vrot.lane.b32.xlu1 %v444_v48, %s807_s5  ;;  %v542_v55 = vadd.f32 %v540_v50, %v536_v45  ;;  %v543_v56 = vadd.f32 %v541_v51, %v537_v49  ;;  %v594_v57 = vmul.f32 %v593_v38, %v842_v3  ;;  %v595_v58 = vmul.f32 %v593_v38, %v844_v4 }
  0x4f   :  { %447 = vrot.lane.b32.xlu0 %v437_v41, %s807_s5  ;;  %v493_v59 = vrot.slane %v486_v52, %v869_v12  ;;  %v603_v61 = vstv %s999_s30  ;;  %v609_v62 = vstv %s1001_s3  ;;  %v598_v2 = vmul.f32 %v597_v60, %v851_v6 }
  0x50   :  { %v548_v63 = vadd.f32 %v546_v53, %v542_v55  ;;  %v549_v1 = vadd.f32 %v547_v54, %v543_v56  ;;  %v599_v5 = vmul.f32 %v597_v60, %v853_v7  ;;  %v604_v15 = vmul.f32 %v603_v61, %v859_v9 }
  0x51   :  { %v494_v8 = vcombine.high %v493_v59, %v493_v59  ;;  %v501_v13 = vrot.slane %v493_v59, %v869_v12  ;;  %v605_v16 = vmul.f32 %v603_v61, %v861_v10  ;;  %v600_v18 = vadd.f32 %v598_v2, %v594_v57 }
  0x52   :  { %v552_v17 = vcombine.low %v548_v63, %v549_v1  ;;  %v601_v19 = vadd.f32 %v599_v5, %v595_v58  ;;  %v610_v20 = vmul.f32 %v609_v62, %v867_v11  ;;  %v611_v22 = vmul.f32 %v609_v62, %v871_v14 }
  0x53   :  { %v508_v21 = vrot.slane %v494_v8, %v869_v12  ;;  %511 = vrot.lane.b32.xlu0 %v501_v13, %s808_s8  ;;  %v606_v24 = vadd.f32 %v604_v15, %v600_v18  ;;  %v348_v26 = vstv %s1021_s4  ;;  %v352_v35 = vstv %s702_s6 }
  0x54   :  { %v559_v23 = vrot.slane %v552_v17, %v869_v12  ;;  %v607_v25 = vadd.f32 %v605_v16, %v601_v19  ;;  %v349_v33 = vmul.f32 %v348_v26, %v842_v3  ;;  %v350_v34 = vmul.f32 %v348_v26, %v844_v4 }
  0x55   :  { %513 = vrot.lane.b32.xlu1 %v508_v21, %s808_s8  ;;  %v612_v29 = vadd.f32 %v610_v20, %v606_v24  ;;  %v353_v37 = vmul.f32 %v352_v35, %v851_v6  ;;  %v354_v39 = vmul.f32 %v352_v35, %v853_v7  ;;  %v358_v40 = vstv %s703_s7 }
  0x56   :  { %v560_v27 = vcombine.high %v559_v23, %v559_v23  ;;  %v567_v28 = vrot.slane %v559_v23, %v869_v12  ;;  %v613_v30 = vadd.f32 %v611_v22, %v607_v25  ;;  %v359_v41 = vmul.f32 %v358_v40, %v859_v9 }
  0x57   :  { %v360_v42 = vmul.f32 %v358_v40, %v861_v10  ;;  %v364_v43 = vstv %s704_s9  ;;  %v355_v3 = vadd.f32 %v353_v37, %v349_v33  ;;  %v356_v46 = vadd.f32 %v354_v39, %v350_v34 }
  0x58   :  { %v574_v31 = vrot.slane %v560_v27, %v869_v12  ;;  %577 = vrot.lane.b32.xlu0 %v567_v28, %s809_s10  ;;  %v616_v32 = vcombine.low %v612_v29, %v613_v30  ;;  %v365_v4 = vmul.f32 %v364_v43, %v867_v11  ;;  %v366_v47 = vmul.f32 %v364_v43, %v871_v14 }
  0x59   :  { %v361_v6 = vadd.f32 %v359_v41, %v355_v3  ;;  %v362_v7 = vadd.f32 %v360_v42, %v356_v46  ;;  %v1056_v38 = vand.u32 127, %v39_v0 }
  0x5a   :  { %579 = vrot.lane.b32.xlu1 %v574_v31, %s809_s10  ;;  %v623_v36 = vrot.slane %v616_v32, %v869_v12 }
  0x5b   :  { %v367_v9 = vadd.f32 %v365_v4, %v361_v6  ;;  %v368_v49 = vadd.f32 %v366_v47, %v362_v7  ;;  %v1059_v57 = vadd.s32 128, %v1056_v38  ;;  %v46_v58 = vand.u32 15, %v1056_v38 }
  0x5c   :  { %v624_v44 = vcombine.high %v623_v36, %v623_v36  ;;  %v631_v45 = vrot.slane %v623_v36, %v869_v12  ;;  %vm206_vm0 = vcmp.lt.s32.totalorder %v1056_v38, 16  ;;  %vm66_vm2 = vcmp.ge.s32.totalorder %v1056_v38, 16 }
  0x5d   :  { %v371_v10 = vcombine.low %v367_v9, %v368_v49  ;;  %v53_v59 = vand.u32 15, %v1059_v57  ;;  %vm1064_vm1 = vcmp.ge.s32.totalorder %v46_v58, 1  ;;  %vm1069_vm3 = vcmp.lt.s32.totalorder %v46_v58, 15 }
  0x5e   :  { %v638_v48 = vrot.slane %v624_v44, %v869_v12  ;;  %641 = vrot.lane.b32.xlu0 %v631_v45, %s810_s11  ;;  %vm270_vm4 = vcmp.lt.s32.totalorder %v1056_v38, 15  ;;  %vm142_vm5 = vcmp.lt.s32.totalorder %v1056_v38, 17  ;;  %vm145_vm7 = vmand %vm66_vm2, %vm1064_vm1  ;;  %vm336_vm9 = vcmp.lt.s32.totalorder %v1056_v38, 1 }
  0x5f   :  { %v378_v50 = vrot.slane %v371_v10, %v869_v12  ;;  %vm1077_vm6 = vcmp.ge.s32.totalorder %v53_v59, 1  ;;  %vm1085_vm8 = vcmp.lt.s32.totalorder %v53_v59, 15  ;;  %vm1094_vm10 = vmand %vm66_vm2, %vm1069_vm3  ;;  %vm451_vm11 = vcmp.lt.s32.totalorder %v1056_v38, 127 }
  0x60   :  { %643 = vrot.lane.b32.xlu1 %v638_v48, %s810_s11  ;;  %vm69_vm12 = vcmp.lt.s32.totalorder %v1059_v57, 240  ;;  %vm515_vm13 = vcmp.lt.s32.totalorder %v1056_v38, 113  ;;  %vm581_vm15 = vcmp.lt.s32.totalorder %v1056_v38, 112 }
  0x61   :  { %v379_v51 = vcombine.high %v378_v50, %v378_v50  ;;  %v386_v52 = vrot.slane %v378_v50, %v869_v12  ;;  %vm519_vm14 = vmand %vm69_vm12, %vm1077_vm6 }
  0x63   :  { %v393_v53 = vrot.slane %v379_v51, %v869_v12 }
  0xaa   :  { %v203_v11 = vpop.permute.xlu1 %202 }
  0xad   :  { %v139_v54 = vpop.permute.xlu0 %138 }
  0xae   :  { %v205_v14 = vpop.permute.xlu1 %204 }
  0xaf   :  { %v208_v62 = vsel %vm206_vm0, %v205_v14, %v203_v11  ;;  %v207_v17 = vsel %vm206_vm0, %v203_v11, %v205_v14  ;;  %vm645_vm0 = vcmp.lt.s32.totalorder %v1056_v38, 111 }
  0xb0   :  { %v213_v18 = vsel %vm66_vm2, %v208_v62, 0.0 }
  0xb3   :  { %v267_v55 = vpop.permute.xlu0 %266 }
  0xb5   :  { %v269_v56 = vpop.permute.xlu1 %268 }
  0xb6   :  { %v271_v5 = vsel %vm270_vm4, %v267_v55, %v269_v56  ;;  %v272_v8 = vsel %vm270_vm4, %v269_v56, %v267_v55 }
  0xb7   :  { %v279_v25 = vsel %vm1094_vm10, %v272_v8, 0.0  ;;  %v280_v26 = vsel %vm1085_vm8, %v271_v5, 0.0 }
  0xb9   :  { %v333_v60 = vpop.permute.xlu0 %332 }
  0xbb   :  { %v335_v61 = vpop.permute.xlu1 %334 }
  0xbc   :  { %v337_v21 = vsel %vm336_vm9, %v333_v60, %v335_v61  ;;  %v338_v22 = vsel %vm336_vm9, %v335_v61, %v333_v60 }
  0xbd   :  { %v141_v2 = vpop.permute.xlu0 %140  ;;  %v343_v31 = vsel %vm1064_vm1, %v338_v22, 0.0  ;;  %v344_v32 = vsel %vm1077_vm6, %v337_v21, 0.0 }
  0xbe   :  { %v143_v15 = vsel %vm142_vm5, %v139_v54, %v141_v2  ;;  %v144_v16 = vsel %vm142_vm5, %v141_v2, %v139_v54 }
  0xbf   :  { %v151_v19 = vsel %vm145_vm7, %v144_v16, 0.0  ;;  %v152_v20 = vsel %vm1077_vm6, %v143_v15, 0.0 }
  0xc0   :  { %v215_v23 = vadd.f32 %v213_v18, %v151_v19  ;;  %v216_v24 = vadd.f32 %v207_v17, %v152_v20  ;;  %v450_v27 = vpop.permute.xlu1 %449 }
  0xc1   :  { %v448_v28 = vpop.permute.xlu0 %447 }
  0xc2   :  { %v281_v29 = vadd.f32 %v279_v25, %v215_v23  ;;  %v282_v30 = vadd.f32 %v280_v26, %v216_v24  ;;  %v452_v35 = vsel %vm451_vm11, %v448_v28, %v450_v27  ;;  %v453_v36 = vsel %vm451_vm11, %v450_v27, %v448_v28 }
  0xc3   :  { %v458_v41 = vsel %vm1069_vm3, %v452_v35, 0.0  ;;  %v459_v42 = vsel %vm1085_vm8, %v453_v36, 0.0 }
  0xc4   :  { %v345_v33 = vadd.f32 %v343_v31, %v281_v29  ;;  %v346_v34 = vadd.f32 %v344_v32, %v282_v30 }
  0xc5   :  { %v512_v37 = vpop.permute.xlu0 %511 }
  0xc6   :  { %v396_v39 = vadd.f32 %v386_v52, %v345_v33  ;;  %v397_v40 = vadd.f32 %v393_v53, %v346_v34 }
  0xc7   :  { %v514_v43 = vpop.permute.xlu1 %513 }
  0xc8   :  { %v460_v44 = vadd.f32 %v458_v41, %v396_v39  ;;  %v461_v45 = vadd.f32 %v459_v42, %v397_v40  ;;  %v516_v3 = vsel %vm515_vm13, %v512_v37, %v514_v43  ;;  %v517_v46 = vsel %vm515_vm13, %v514_v43, %v512_v37 }
  0xc9   :  { %v524_v4 = vsel %vm1064_vm1, %v516_v3, 0.0  ;;  %v525_v47 = vsel %vm519_vm14, %v517_v46, 0.0  ;;  %vm649_vm1 = vmand %vm69_vm12, %vm1085_vm8 }
  0xca   :  { %v526_v48 = vadd.f32 %v524_v4, %v460_v44  ;;  %v527_v6 = vadd.f32 %v525_v47, %v461_v45  ;;  %v578_v7 = vpop.permute.xlu0 %577 }
  0xcc   :  { %v580_v9 = vpop.permute.xlu1 %579 }
  0xcd   :  { %v582_v49 = vsel %vm581_vm15, %v578_v7, %v580_v9  ;;  %v583_v10 = vsel %vm581_vm15, %v580_v9, %v578_v7 }
  0xce   :  { %v589_v50 = vsel %vm69_vm12, %v583_v10, 0.0  ;;  %v590_v51 = vadd.f32 %v582_v49, %v526_v48 }
  0xcf   :  { %v591_v52 = vadd.f32 %v589_v50, %v527_v6 }
  0xd0   :  { %v642_v53 = vpop.permute.xlu0 %641 }
  0xd2   :  { %v644_v11 = vpop.permute.xlu1 %643 }
  0xd3   :  { %v646_v54 = vsel %vm645_vm0, %v642_v53, %v644_v11  ;;  %v647_v14 = vsel %vm645_vm0, %v644_v11, %v642_v53 }
  0xd4   :  { %v654_v55 = vsel %vm1069_vm3, %v646_v54, 0.0  ;;  %v655_v56 = vsel %vm649_vm1, %v647_v14, 0.0 }
  0xd5   :  { %v656_v58 = vadd.f32 %v654_v55, %v590_v51  ;;  %v657_v59 = vadd.f32 %v655_v56, %v591_v52 }
  0xd7   :  { %v660_v60 = vcombine.low %v656_v58, %v657_v59 }
  0xd9   :  { %721 = vst.sshfl [vmem:[#allocation7] sm:$0x33 pattern:$0x76325410] %v660_v60 }
  0xda   :  { %781 = shalt.err (!%p778_p3)
}
  0xdb   :  { %s782_s17 = scalar_lea.hbm %s1149_s2, 64 }
  0xdc   :  { %p783_p4 = scmp.ne.s32.totalorder %s1149_s2, %s782_s17  ;;  %p786_p5 = scmp.lt.u32.totalorder %s782_s17, %s1149_s2 }
  0xde   :  { %p788_p6 = pnand %p786_p5, %p783_p4 }
  0xe0   :  { %791 = shalt.err (!%p788_p6)
}
  0xe1   :  { %679 = dma.vmem_to_hbm [thread:$0]  %s677_s13, 64, %s1149_s2, [#allocation4]  }
  0xe2   :  { %796 = dma.done.wait [#allocation4], 64  }
  0xe3   :  { %797 = vsyncadd [#allocation4], 4294967232 }
  0xe4   :  { %683 = vsyncpa [#allocation3], 1 }
  0xe5   :  { %684 = vsyncpa [#allocation4], 1 }
  0xe6   :  { %685 = vsyncpa [#allocation5], 1 }

</bundles_post_ra>
